<compile_context>
chip_gen: v5e
topology: v5e:2x2
jax: 0.10.0
libtpu: 0.0.40
codegen_flags: <defaults>
</compile_context>

<pallas_src>
import functools

import jax
import jax.numpy as jnp
from jax.experimental import pallas as pl
from jax.experimental.pallas import tpu as pltpu


def _round_up(x, m):
    return (x + m - 1) // m * m


def _cdiv(a, b):
    return (a + b - 1) // b


def model_kernel(emb_ref, w_ref, b_ref, alpha_ref, wu_ref, out_ref, agg_ref,
                 *, n_layer):
    """Fused backbone + predictor for one (row tile i, vocab tile j) grid point.

    emb_ref:   (TM, Dp)     compute dtype  token embeddings (row tile i)
    w_ref:     (L, Dp, Dp)  compute dtype  per-layer MLP weights (grid invariant)
    b_ref:     (L, Dp)      compute dtype  per-layer biases      (grid invariant)
    alpha_ref: (L,)         f32 (SMEM)     per-layer aggregation scalars
    wu_ref:    (Dp, TV)     compute dtype  unembedding tile j
    out_ref:   (TM, TV)     out dtype      logits tile (i, j)
    agg_ref:   (TM, Dp)     compute dtype  scratch: alpha-weighted aggregate
    """
    j = pl.program_id(1)

    # The backbone depends only on the row tile: run it once per row tile (on
    # the first vocab tile) and cache the aggregate -- already cast to the
    # matmul compute dtype -- in VMEM scratch.
    # NOTE: correctness relies on the vocab axis being the sequential innermost
    # axis on a single core ("arbitrary"); do not parallelize / core-split it
    # without giving each core its own initialization.
    @pl.when(j == 0)
    def _():
        h = emb_ref[...].astype(jnp.float32)          # residual stream (TM, Dp)
        agg = jnp.zeros_like(h)
        mm_dtype = w_ref.dtype                        # bf16 or f32 matmul inputs
        for l in range(n_layer):                      # small & static -> unrolled
            pre = jnp.dot(h.astype(mm_dtype), w_ref[l],
                          preferred_element_type=jnp.float32)
            pre = pre + b_ref[l][None, :].astype(jnp.float32)
            h = h + jnp.maximum(pre, 0.0)             # residual + relu (f32 VPU)
            agg = agg + alpha_ref[l] * h              # scalar-from-SMEM multiply
        agg_ref[...] = agg.astype(agg_ref.dtype)      # cast once, reuse per j

    # Predictor: aggregate @ unembed tile (f32 accumulation on the MXU).
    out_ref[...] = jnp.dot(agg_ref[...], wu_ref[...],
                           preferred_element_type=jnp.float32
                           ).astype(out_ref.dtype)


def prepare_params(embed_table, w, b, alpha, wu, *,
                   compute_dtype=jnp.bfloat16, tv_max=2048):
    """One-time padding/casting of the weights (hoisted out of the forward path)."""
    L, D, _ = w.shape
    V = wu.shape[1]
    cd = jnp.dtype(compute_dtype)

    Dp = _round_up(D, 128)
    # Vocab tiling that minimizes padding: split V into ceil(V / tv_max) tiles
    # of near-equal, lane-aligned size instead of forcing tv_max-sized tiles.
    n_voc = max(1, _cdiv(V, tv_max))
    tv = _round_up(_cdiv(V, n_voc), 128)
    Vp = _round_up(V, tv)

    # TODO(synk): optional int8 (v5e/v6e) / fp8 (v7x) W_U path with fused
    # per-column dequant in the predictor epilogue.
    embed_p = jnp.zeros((embed_table.shape[0], Dp), cd).at[:, :D].set(
        embed_table.astype(cd))
    w_p = jnp.zeros((L, Dp, Dp), cd).at[:, :D, :D].set(w.astype(cd))
    b_p = jnp.zeros((L, Dp), cd).at[:, :D].set(b.astype(cd))
    wu_p = jnp.zeros((Dp, Vp), cd).at[:D, :V].set(wu.astype(cd))
    alpha_f = alpha.astype(jnp.float32)

    return dict(embed=embed_p, w=w_p, b=b_p, alpha=alpha_f, wu=wu_p,
                meta=dict(L=L, D=D, V=V, Dp=Dp, tv=tv, Vp=Vp, cd=cd))


def _vmem_capacity_bytes():
    try:
        return int(pltpu.get_tpu_info().vmem_capacity_bytes)
    except Exception:
        return 64 * 1024 * 1024   # conservative: v7x per-TensorCore VMEM


_FALLBACK_ERRORS = (ValueError, TypeError, NotImplementedError,
                    getattr(pltpu, "LoweringException", NotImplementedError))


def model_forward(tokens, params, *, tm_max=512, out_dtype=jnp.float32):
    """tokens: (B, S) int32 + prepared params -> logits (B, S, d_vocab)."""
    meta = params["meta"]
    L, D, V = meta["L"], meta["D"], meta["V"]
    Dp, tv, Vp = meta["Dp"], meta["tv"], meta["Vp"]
    cd = meta["cd"]
    od = jnp.dtype(out_dtype)

    B, S = tokens.shape
    M = B * S
    itemsize = cd.itemsize
    out_itemsize = od.itemsize

    n_voc_tiles = Vp // tv
    wu_bufs = 1 if n_voc_tiles == 1 else 2

    # Row tiling: bf16 packs 2 rows per sublane -> align to 16; split M evenly
    # across tiles to minimize padded rows; shrink the tile if the VMEM
    # footprint would not fit the per-generation budget.
    row_align = 8 * (4 // itemsize)
    budget = int(0.85 * _vmem_capacity_bytes())   # ~54 MiB v7x, ~109 MiB v5e/v6e
    tm = min(tm_max, _round_up(_cdiv(M, max(1, _cdiv(M, tm_max))), row_align))

    def footprint(tm_):
        return (itemsize * (2 * tm_ * Dp            # emb tile (double-buffered)
                            + L * Dp * Dp + L * Dp  # W, b (resident, Buffered(1))
                            + wu_bufs * Dp * tv     # W_U tile(s)
                            + tm_ * Dp)             # aggregate scratch
                + out_itemsize * 2 * tm_ * tv)      # logits tile (double-buffered)

    while footprint(tm) > budget and tm > row_align:
        tm = max(row_align, _round_up(tm // 2, row_align))
    # TODO(synk): if L*Dp*Dp alone exceeds the budget, stream W per layer
    # (extra grid axis or emit_pipeline over l) instead of keeping it resident.

    Mp = _round_up(M, tm)
    n_row_tiles = Mp // tm
    vmem_limit = int(min(max(int(1.3 * footprint(tm)), 32 * 1024 * 1024), budget))

    # --- Glue: embedding gather (columns already Dp-padded & compute-dtype). ---
    # TODO(synk): fuse the gather into the kernel (scalar-prefetched token ids
    # + per-row DMA) to remove one (M, Dp) HBM round trip.
    emb = jnp.take(params["embed"], tokens.reshape(M), axis=0)       # (M, Dp)
    if Mp != M:
        # Padded rows compute relu(b)-driven (discarded) logits; harmless.
        emb = jnp.zeros((Mp, Dp), cd).at[:M].set(emb)

    cost = pl.CostEstimate(
        flops=2 * Mp * L * Dp * Dp + 2 * Mp * Dp * Vp,
        transcendentals=0,
        bytes_accessed=(itemsize * (Mp * Dp + L * Dp * Dp + L * Dp
                                    + n_row_tiles * Dp * Vp)   # W_U per row tile
                        + out_itemsize * Mp * Vp),
    )
    # TODO(synk): for training-sized M with huge V, a two-phase kernel
    # (backbone writes agg once; predictor vocab-outer) makes W_U a single pass.

    kernel = functools.partial(model_kernel, n_layer=L)

    def call(single_buffer_invariants):
        def inv(block_shape, index_map):
            # Grid-invariant operand: single-buffer to halve its VMEM footprint.
            if single_buffer_invariants:
                return pl.BlockSpec(block_shape, index_map,
                                    pipeline_mode=pl.Buffered(1))
            return pl.BlockSpec(block_shape, index_map)

        if n_voc_tiles == 1:
            wu_spec = inv((Dp, tv), lambda i, j: (0, j))          # grid invariant
        else:   # vocab-tiled: default double buffering to pipeline over j
            wu_spec = pl.BlockSpec((Dp, tv), lambda i, j: (0, j))

        return pl.pallas_call(
            kernel,
            out_shape=jax.ShapeDtypeStruct((Mp, Vp), od),
            grid_spec=pltpu.PrefetchScalarGridSpec(
                num_scalar_prefetch=0,
                grid=(n_row_tiles, n_voc_tiles),
                in_specs=[
                    pl.BlockSpec((tm, Dp), lambda i, j: (i, 0)),        # emb
                    inv((L, Dp, Dp), lambda i, j: (0, 0, 0)),           # W
                    inv((L, Dp), lambda i, j: (0, 0)),                  # b
                    pl.BlockSpec(memory_space=pltpu.MemorySpace.SMEM),  # alpha
                    wu_spec,                                            # W_U
                ],
                out_specs=pl.BlockSpec((tm, tv), lambda i, j: (i, j)),
                scratch_shapes=[pltpu.VMEM((tm, Dp), cd)],
            ),
            compiler_params=pltpu.CompilerParams(
                # Vocab axis must stay "arbitrary" (sequential) so the
                # pl.when(j == 0) aggregate caching stays valid.
                dimension_semantics=("parallel", "arbitrary"),
                vmem_limit_bytes=vmem_limit,
            ),
            cost_estimate=cost,
        )(emb, params["w"], params["b"], params["alpha"], params["wu"])

    try:
        logits_flat = call(True)
    except _FALLBACK_ERRORS:
        # Only if this jax build rejects pl.Buffered(1) single-buffering.
        logits_flat = call(False)

    if Mp == M and Vp == V:
        return logits_flat.reshape(B, S, V)
    return logits_flat[:M, :V].reshape(B, S, V)


def reference_forward(tokens, embed_table, w, b, alpha, wu):
    """Pure-JAX reference of the same forward pass."""
    emb = jnp.take(embed_table, tokens, axis=0)                      # (B, S, D)
    h = emb
    agg = jnp.zeros_like(h)
    for l in range(w.shape[0]):
        h = h + jax.nn.relu(jnp.einsum("bsd,de->bse", h, w[l]) + b[l])
        agg = agg + alpha[l] * h
    return jnp.einsum("bsd,dv->bsv", agg, wu)


if __name__ == "__main__":
    # Small shapes consistent with the module: tokens '...' -> logits '... d_vocab'
    B, S = 2, 8
    d_model, n_layer, d_vocab = 32, 4, 64

    key = jax.random.PRNGKey(0)
    k_tok, k_emb, k_w, k_b, k_a, k_u = jax.random.split(key, 6)

    tokens = jax.random.randint(k_tok, (B, S), 0, d_vocab, dtype=jnp.int32)
    embed_table = jax.random.normal(k_emb, (d_vocab, d_model), jnp.float32) * 0.1
    w = jax.random.normal(k_w, (n_layer, d_model, d_model), jnp.float32) * 0.1
    b = jax.random.normal(k_b, (n_layer, d_model), jnp.float32) * 0.01
    alpha = jax.random.normal(k_a, (n_layer,), jnp.float32) * 0.5
    wu = jax.random.normal(k_u, (d_model, d_vocab), jnp.float32) * 0.1

    ref = reference_forward(tokens, embed_table, w, b, alpha, wu)

    # Default: bf16 matmul inputs (MXU-friendly on all generations), f32 accum.
    params_bf16 = prepare_params(embed_table, w, b, alpha, wu)
    logits_bf16 = jax.block_until_ready(model_forward(tokens, params_bf16))
    assert logits_bf16.shape == (B, S, d_vocab)
    assert jnp.allclose(logits_bf16, ref, atol=5e-2, rtol=5e-2), "bf16 mismatch"

    # f32 compute path (exact-ish vs. the reference).
    params_f32 = prepare_params(embed_table, w, b, alpha, wu,
                                compute_dtype=jnp.float32)
    logits_f32 = jax.block_until_ready(model_forward(tokens, params_f32))
    assert logits_f32.shape == (B, S, d_vocab)
    assert jnp.allclose(logits_f32, ref, atol=1e-4, rtol=1e-4), "f32 mismatch"

    print("KERNEL_OK")
</pallas_src>

<mosaic_0001>
module attributes {stable_mosaic.version = 11 : i64} {
  func.func @model_kernel(%arg0: i32, %arg1: i32, %arg2: memref<16x128xbf16, #tpu.memory_space<vmem>>, %arg3: memref<4x128x128xbf16, #tpu.memory_space<vmem>>, %arg4: memref<4x128xbf16, #tpu.memory_space<vmem>>, %arg5: memref<4xf32, #tpu.memory_space<smem>>, %arg6: memref<128x128xbf16, #tpu.memory_space<vmem>>, %arg7: memref<16x128xf32, #tpu.memory_space<vmem>>, %arg8: memref<16x128xbf16, #tpu.memory_space<vmem>>) attributes {dimension_semantics = [#tpu.dimension_semantics<parallel>, #tpu.dimension_semantics<arbitrary>], iteration_bounds = array<i64: 1, 1>, scalar_prefetch = 0 : i64, scratch_operands = 1 : i64, tpu.core_type = #tpu.core_type<tc>, window_params = [{transform_indices = @transform_0, window_bounds = array<i64: 16, 128>}, {pipeline_mode = #tpu.pipeline_mode<synchronous>, transform_indices = @transform_1, window_bounds = array<i64: 4, 128, 128>}, {pipeline_mode = #tpu.pipeline_mode<synchronous>, transform_indices = @transform_2, window_bounds = array<i64: 4, 128>}, {transform_indices = @transform_3, window_bounds = array<i64: 4>}, {pipeline_mode = #tpu.pipeline_mode<synchronous>, transform_indices = @transform_4, window_bounds = array<i64: 128, 128>}, {transform_indices = @transform_5, window_bounds = array<i64: 16, 128>}]} {
    %c0_i32 = arith.constant 0 : i32
    %0 = arith.cmpi eq, %arg1, %c0_i32 : i32
    %1 = arith.extui %0 : i1 to i32
    %c0_i32_0 = arith.constant 0 : i32
    %2 = arith.cmpi ne, %1, %c0_i32_0 : i32
    scf.if %2 {
      %c0_6 = arith.constant 0 : index
      %c0_7 = arith.constant 0 : index
      %7 = vector.load %arg2[%c0_6, %c0_7] : memref<16x128xbf16, #tpu.memory_space<vmem>>, vector<16x128xbf16>
      %8 = arith.extf %7 : vector<16x128xbf16> to vector<16x128xf32>
      %cst_8 = arith.constant 0.000000e+00 : f32
      %9 = vector.broadcast %cst_8 : f32 to vector<16x128xf32>
      %10 = arith.truncf %8 : vector<16x128xf32> to vector<16x128xbf16>
      %c0_9 = arith.constant 0 : index
      %c0_10 = arith.constant 0 : index
      %c0_11 = arith.constant 0 : index
      %11 = vector.load %arg3[%c0_9, %c0_10, %c0_11] : memref<4x128x128xbf16, #tpu.memory_space<vmem>>, vector<1x128x128xbf16>
      %12 = vector.shape_cast %11 : vector<1x128x128xbf16> to vector<128x128xbf16>
      %cst_12 = arith.constant dense<0.000000e+00> : vector<16x128xf32>
      %13 = tpu.matmul %10, %12, %cst_12 {dimension_numbers = #tpu.dot_dimension_numbers<[1], [0], [0], [1], [0, 0, 1, 1], [], []>} : vector<16x128xbf16>, vector<128x128xbf16>, vector<16x128xf32> -> vector<16x128xf32>
      %c0_13 = arith.constant 0 : index
      %c0_14 = arith.constant 0 : index
      %14 = vector.load %arg4[%c0_13, %c0_14] : memref<4x128xbf16, #tpu.memory_space<vmem>>, vector<1x128xbf16>
      %15 = vector.shape_cast %14 : vector<1x128xbf16> to vector<128xbf16>
      %16 = vector.shape_cast %15 : vector<128xbf16> to vector<1x128xbf16>
      %17 = arith.extf %16 : vector<1x128xbf16> to vector<1x128xf32>
      %18 = vector.broadcast %17 : vector<1x128xf32> to vector<16x128xf32>
      %19 = arith.addf %13, %18 : vector<16x128xf32>
      %cst_15 = arith.constant 0.000000e+00 : f32
      %20 = vector.broadcast %cst_15 : f32 to vector<16x128xf32>
      %21 = arith.maximumf %19, %20 : vector<16x128xf32>
      %22 = arith.addf %8, %21 : vector<16x128xf32>
      %c0_16 = arith.constant 0 : index
      %23 = memref.load %arg5[%c0_16] : memref<4xf32, #tpu.memory_space<smem>>
      %24 = vector.broadcast %23 : f32 to vector<16x128xf32>
      %25 = arith.mulf %24, %22 : vector<16x128xf32>
      %26 = arith.addf %9, %25 : vector<16x128xf32>
      %27 = arith.truncf %22 : vector<16x128xf32> to vector<16x128xbf16>
      %c1 = arith.constant 1 : index
      %c0_17 = arith.constant 0 : index
      %c0_18 = arith.constant 0 : index
      %28 = vector.load %arg3[%c1, %c0_17, %c0_18] : memref<4x128x128xbf16, #tpu.memory_space<vmem>>, vector<1x128x128xbf16>
      %29 = vector.shape_cast %28 : vector<1x128x128xbf16> to vector<128x128xbf16>
      %cst_19 = arith.constant dense<0.000000e+00> : vector<16x128xf32>
      %30 = tpu.matmul %27, %29, %cst_19 {dimension_numbers = #tpu.dot_dimension_numbers<[1], [0], [0], [1], [0, 0, 1, 1], [], []>} : vector<16x128xbf16>, vector<128x128xbf16>, vector<16x128xf32> -> vector<16x128xf32>
      %c1_20 = arith.constant 1 : index
      %c0_21 = arith.constant 0 : index
      %31 = vector.load %arg4[%c1_20, %c0_21] : memref<4x128xbf16, #tpu.memory_space<vmem>>, vector<1x128xbf16>
      %32 = vector.shape_cast %31 : vector<1x128xbf16> to vector<128xbf16>
      %33 = vector.shape_cast %32 : vector<128xbf16> to vector<1x128xbf16>
      %34 = arith.extf %33 : vector<1x128xbf16> to vector<1x128xf32>
      %35 = vector.broadcast %34 : vector<1x128xf32> to vector<16x128xf32>
      %36 = arith.addf %30, %35 : vector<16x128xf32>
      %cst_22 = arith.constant 0.000000e+00 : f32
      %37 = vector.broadcast %cst_22 : f32 to vector<16x128xf32>
      %38 = arith.maximumf %36, %37 : vector<16x128xf32>
      %39 = arith.addf %22, %38 : vector<16x128xf32>
      %c1_23 = arith.constant 1 : index
      %40 = memref.load %arg5[%c1_23] : memref<4xf32, #tpu.memory_space<smem>>
      %41 = vector.broadcast %40 : f32 to vector<16x128xf32>
      %42 = arith.mulf %41, %39 : vector<16x128xf32>
      %43 = arith.addf %26, %42 : vector<16x128xf32>
      %44 = arith.truncf %39 : vector<16x128xf32> to vector<16x128xbf16>
      %c2 = arith.constant 2 : index
      %c0_24 = arith.constant 0 : index
      %c0_25 = arith.constant 0 : index
      %45 = vector.load %arg3[%c2, %c0_24, %c0_25] : memref<4x128x128xbf16, #tpu.memory_space<vmem>>, vector<1x128x128xbf16>
      %46 = vector.shape_cast %45 : vector<1x128x128xbf16> to vector<128x128xbf16>
      %cst_26 = arith.constant dense<0.000000e+00> : vector<16x128xf32>
      %47 = tpu.matmul %44, %46, %cst_26 {dimension_numbers = #tpu.dot_dimension_numbers<[1], [0], [0], [1], [0, 0, 1, 1], [], []>} : vector<16x128xbf16>, vector<128x128xbf16>, vector<16x128xf32> -> vector<16x128xf32>
      %c2_27 = arith.constant 2 : index
      %c0_28 = arith.constant 0 : index
      %48 = vector.load %arg4[%c2_27, %c0_28] : memref<4x128xbf16, #tpu.memory_space<vmem>>, vector<1x128xbf16>
      %49 = vector.shape_cast %48 : vector<1x128xbf16> to vector<128xbf16>
      %50 = vector.shape_cast %49 : vector<128xbf16> to vector<1x128xbf16>
      %51 = arith.extf %50 : vector<1x128xbf16> to vector<1x128xf32>
      %52 = vector.broadcast %51 : vector<1x128xf32> to vector<16x128xf32>
      %53 = arith.addf %47, %52 : vector<16x128xf32>
      %cst_29 = arith.constant 0.000000e+00 : f32
      %54 = vector.broadcast %cst_29 : f32 to vector<16x128xf32>
      %55 = arith.maximumf %53, %54 : vector<16x128xf32>
      %56 = arith.addf %39, %55 : vector<16x128xf32>
      %c2_30 = arith.constant 2 : index
      %57 = memref.load %arg5[%c2_30] : memref<4xf32, #tpu.memory_space<smem>>
      %58 = vector.broadcast %57 : f32 to vector<16x128xf32>
      %59 = arith.mulf %58, %56 : vector<16x128xf32>
      %60 = arith.addf %43, %59 : vector<16x128xf32>
      %61 = arith.truncf %56 : vector<16x128xf32> to vector<16x128xbf16>
      %c3 = arith.constant 3 : index
      %c0_31 = arith.constant 0 : index
      %c0_32 = arith.constant 0 : index
      %62 = vector.load %arg3[%c3, %c0_31, %c0_32] : memref<4x128x128xbf16, #tpu.memory_space<vmem>>, vector<1x128x128xbf16>
      %63 = vector.shape_cast %62 : vector<1x128x128xbf16> to vector<128x128xbf16>
      %cst_33 = arith.constant dense<0.000000e+00> : vector<16x128xf32>
      %64 = tpu.matmul %61, %63, %cst_33 {dimension_numbers = #tpu.dot_dimension_numbers<[1], [0], [0], [1], [0, 0, 1, 1], [], []>} : vector<16x128xbf16>, vector<128x128xbf16>, vector<16x128xf32> -> vector<16x128xf32>
      %c3_34 = arith.constant 3 : index
      %c0_35 = arith.constant 0 : index
      %65 = vector.load %arg4[%c3_34, %c0_35] : memref<4x128xbf16, #tpu.memory_space<vmem>>, vector<1x128xbf16>
      %66 = vector.shape_cast %65 : vector<1x128xbf16> to vector<128xbf16>
      %67 = vector.shape_cast %66 : vector<128xbf16> to vector<1x128xbf16>
      %68 = arith.extf %67 : vector<1x128xbf16> to vector<1x128xf32>
      %69 = vector.broadcast %68 : vector<1x128xf32> to vector<16x128xf32>
      %70 = arith.addf %64, %69 : vector<16x128xf32>
      %cst_36 = arith.constant 0.000000e+00 : f32
      %71 = vector.broadcast %cst_36 : f32 to vector<16x128xf32>
      %72 = arith.maximumf %70, %71 : vector<16x128xf32>
      %73 = arith.addf %56, %72 : vector<16x128xf32>
      %c3_37 = arith.constant 3 : index
      %74 = memref.load %arg5[%c3_37] : memref<4xf32, #tpu.memory_space<smem>>
      %75 = vector.broadcast %74 : f32 to vector<16x128xf32>
      %76 = arith.mulf %75, %73 : vector<16x128xf32>
      %77 = arith.addf %60, %76 : vector<16x128xf32>
      %78 = arith.truncf %77 : vector<16x128xf32> to vector<16x128xbf16>
      %c0_38 = arith.constant 0 : index
      %c0_39 = arith.constant 0 : index
      %79 = vector.load %arg8[%c0_38, %c0_39] : memref<16x128xbf16, #tpu.memory_space<vmem>>, vector<16x128xbf16>
      tpu.vector_store %arg8[%c0_38, %c0_39], %78 {strides = array<i32>} : memref<16x128xbf16, #tpu.memory_space<vmem>>, vector<16x128xbf16>,
    } else {
    }
    %c0 = arith.constant 0 : index
    %c0_1 = arith.constant 0 : index
    %3 = vector.load %arg8[%c0, %c0_1] : memref<16x128xbf16, #tpu.memory_space<vmem>>, vector<16x128xbf16>
    %c0_2 = arith.constant 0 : index
    %c0_3 = arith.constant 0 : index
    %4 = vector.load %arg6[%c0_2, %c0_3] : memref<128x128xbf16, #tpu.memory_space<vmem>>, vector<128x128xbf16>
    %cst = arith.constant dense<0.000000e+00> : vector<16x128xf32>
    %5 = tpu.matmul %3, %4, %cst {dimension_numbers = #tpu.dot_dimension_numbers<[1], [0], [0], [1], [0, 0, 1, 1], [], []>} : vector<16x128xbf16>, vector<128x128xbf16>, vector<16x128xf32> -> vector<16x128xf32>
    %c0_4 = arith.constant 0 : index
    %c0_5 = arith.constant 0 : index
    %6 = vector.load %arg7[%c0_4, %c0_5] : memref<16x128xf32, #tpu.memory_space<vmem>>, vector<16x128xf32>
    tpu.vector_store %arg7[%c0_4, %c0_5], %5 {strides = array<i32>} : memref<16x128xf32, #tpu.memory_space<vmem>>, vector<16x128xf32>,
    return
  }
  func.func @transform_0(%arg0: i32, %arg1: i32) -> (i32, i32) {
    %c0_i32 = arith.constant 0 : i32
    %c0_i32_0 = arith.constant 0 : i32
    return %arg0, %c0_i32 : i32, i32
  }
  func.func @transform_1(%arg0: i32, %arg1: i32) -> (i32, i32, i32) {
    %c0_i32 = arith.constant 0 : i32
    %c0_i32_0 = arith.constant 0 : i32
    %c0_i32_1 = arith.constant 0 : i32
    %c0_i32_2 = arith.constant 0 : i32
    return %c0_i32, %c0_i32_0, %c0_i32_1 : i32, i32, i32
  }
  func.func @transform_2(%arg0: i32, %arg1: i32) -> (i32, i32) {
    %c0_i32 = arith.constant 0 : i32
    %c0_i32_0 = arith.constant 0 : i32
    %c0_i32_1 = arith.constant 0 : i32
    return %c0_i32, %c0_i32_0 : i32, i32
  }
  func.func @transform_3(%arg0: i32, %arg1: i32) -> i32 {
    %c0_i32 = arith.constant 0 : i32
    %c0_i32_0 = arith.constant 0 : i32
    return %c0_i32 : i32
  }
  func.func @transform_4(%arg0: i32, %arg1: i32) -> (i32, i32) {
    %c0_i32 = arith.constant 0 : i32
    %c0_i32_0 = arith.constant 0 : i32
    return %c0_i32, %arg1 : i32, i32
  }
  func.func @transform_5(%arg0: i32, %arg1: i32) -> (i32, i32) {
    %c0_i32 = arith.constant 0 : i32
    return %arg0, %arg1 : i32, i32
  }
}

</mosaic_0001>

<bundles_post_ra>
// kernel: tpu_custom_call.1
= control target key start
LH: loop header
LB: loop body
LE: loop exit
PB: predicated region body
PF: predicated region fallthrough
CT: control target
= control target key end

     0   :  { %10 = vsyncpa [#allocation4], 0  ;;  %s1027_s0 = inlined_call_operand.hbm [shape: bf16[16,128], index: 0, kind: input, shape index: {}]   ;;  %s1028_s1 = inlined_call_operand.hbm [shape: bf16[4,128,128], index: 1, kind: input, shape index: {}]   ;;  %s1029_s2 = inlined_call_operand.hbm [shape: bf16[4,128], index: 2, kind: input, shape index: {}]   ;;  %s1030_s3 = inlined_call_operand.vmem [shape: f32[4], index: 3, kind: input, shape index: {}]   ;;  %s1031_s4 = inlined_call_operand.hbm [shape: bf16[128,128], index: 4, kind: input, shape index: {}]   ;;  %s1032_s5 = inlined_call_operand.hbm [shape: f32[16,128], index: 5, kind: output, shape index: {}]  }
   0x1   :  { %11 = vsyncpa [#allocation8], 0 }
   0x2   :  { %12 = vsyncpa [#allocation6], 0 }
   0x3   :  { %13 = vsyncpa [#allocation12], 0 }
   0x4   :  { %14 = vsyncpa [#allocation5], 0  ;;  %s32_s20 = sshll.u32 %s1028_s1, 4  ;;  %s959_s21 = smov [#allocation7]   ;;  %s33_s20 = int_to_ptr.hbm [resolvable:$true] %s32_s20 }
   0x5   :  { %s34_s22 = sshll.u32 %s959_s21, 4  ;;  %s19_s25 = sshll.u32 %s1027_s0, 4  ;;  %s35_s22 = int_to_ptr.vmem [resolvable:$true] %s34_s22  ;;  %s20_s25 = int_to_ptr.hbm [resolvable:$true] %s19_s25 }
   0x6   :  { %s960_s26 = smov 64   ;;  %s961_s27 = smov 4  }
   0x7   :  { %40 = dma.hbm_to_vmem [thread:$0]  %s33_s20, 4096, %s35_s22, [#allocation8], %s960_s26, %s960_s26, %s961_s27  }
   0x8   :  { %s962_s28 = smov [#allocation3]   ;;  %s46_s7 = sshll.u32 %s1029_s2, 4  ;;  %s47_s7 = int_to_ptr.hbm [resolvable:$true] %s46_s7 }
   0x9   :  { %s21_s29 = sshll.u32 %s962_s28, 4  ;;  %s57_s9 = sshll.u32 %s1030_s3, 4  ;;  %s22_s29 = int_to_ptr.vmem [resolvable:$true] %s21_s29  ;;  %s58_s9 = int_to_ptr.vmem [resolvable:$true] %s57_s9 }
   0xa   :  { %27 = dma.hbm_to_vmem [thread:$0]  %s20_s25, 128, %s22_s29, [#allocation4], %s960_s26, %s960_s26, %s961_s27  }
   0xb   :  { %s963_s10 = smov [#allocation9]   ;;  %s964_s0 = smov [#allocation10]  }
   0xc   :  { %s48_s11 = sshll.u32 %s963_s10, 4  ;;  %s65_s14 = sshll.u32 %s1031_s4, 4  ;;  %s49_s11 = int_to_ptr.vmem [resolvable:$true] %s48_s11  ;;  %s66_s14 = int_to_ptr.hbm [resolvable:$true] %s65_s14 }
   0xd   :  { %51 = dma.hbm_to_vmem [thread:$0]  %s47_s7, 32, %s49_s11, [#allocation8]  }
   0xe   :  { %60 = dma.vmem_to_smem %s58_s9, 16, %s964_s0, [#allocation6]  }
   0xf   :  { %s965_s2 = smov [#allocation11]  }
  0x10   :  { %s67_s15 = sshll.u32 %s965_s2, 4  ;;  %s68_s15 = int_to_ptr.vmem [resolvable:$true] %s67_s15 }
  0x11   :  { %73 = dma.hbm_to_vmem [thread:$0]  %s66_s14, 1024, %s68_s15, [#allocation12], %s960_s26, %s960_s26, %s961_s27  }
  0x12   :  { %949 = dma.done.wait [#allocation4], 128  }
  0x13   :  { %950 = vsyncadd [#allocation4], 4294967168 }
  0x14   :  { %951 = dma.done.wait [#allocation8], 4128  }
  0x15   :  { %952 = vsyncadd [#allocation8], 4294963168 }
  0x16   :  { %953 = dma.done.wait [#allocation6], 16  }
  0x17   :  { %954 = vsyncadd [#allocation6], 4294967280 }
  0x18   :  { %955 = dma.done.wait [#allocation12], 1024  }
  0x19   :  { %956 = vsyncadd [#allocation12], 4294966272 }
  0x1a   :  { %94 = sfence }
  0x1b   :  { %v768_v0 = vld [vmem:[#allocation7 + $0x38] sm:$0xff]  ;;  %v767_v1 = vld [vmem:[#allocation7 + $0x30] sm:$0xff]  ;;  %v766_v4 = vld [vmem:[#allocation7 + $0x28] sm:$0xff]  ;;  %s657_s3 = sld [smem:[#allocation10 + $0x1]]  ;;  %s966_s18 = smov [#allocation13]  }
  0x1c   :  { %176 = vmatpush.bf16.msra.mxu0 %v768_v0  ;;  %v776_v2 = vld [vmem:[#allocation7 + $0x78] sm:$0xff]  ;;  %v775_v3 = vld [vmem:[#allocation7 + $0x70] sm:$0xff]  ;;  %v774_v5 = vld [vmem:[#allocation7 + $0x68] sm:$0xff]  ;;  %s194_s4 = sld [smem:[#allocation10]]  ;;  %s571_s19 = sshll.u32 %s966_s18, 4  ;;  %s572_s19 = int_to_ptr.vmem [resolvable:$true] %s571_s19 }
  0x1d   :  { %267 = vmatpush.bf16.msra.mxu1 %v776_v2  ;;  %v765_v6 = vld [vmem:[#allocation7 + $0x20] sm:$0xff]  ;;  %v764_v8 = vld [vmem:[#allocation7 + $0x18] sm:$0xff]  ;;  %v763_v9 = vld [vmem:[#allocation7 + $0x10] sm:$0xff]  ;;  %s690_s16 = sld [smem:[#allocation10 + $0x2]]  ;;  %s573_s22 = sshll.u32 %s1032_s5, 4  ;;  %s574_s22 = int_to_ptr.hbm [resolvable:$true] %s573_s22 }
  0x1e   :  { %v773_v7 = vld [vmem:[#allocation7 + $0x60] sm:$0xff]  ;;  %v762_v10 = vld [vmem:[#allocation7 + $0x8] sm:$0xff]  ;;  %v760_v12 = vld [vmem:[#allocation3] sm:$0xff]  ;;  %s723_s17 = sld [smem:[#allocation10 + $0x3]]  ;;  %s967_s23 = smov 128  }
  0x1f   :  { %v761_v11 = vld [vmem:[#allocation7] sm:$0xff]  ;;  %v772_v13 = vld [vmem:[#allocation7 + $0x58] sm:$0xff]  ;;  %v771_v14 = vld [vmem:[#allocation7 + $0x50] sm:$0xff]  ;;  %s968_s24 = smov 8  }
  0x20   :  { %177 = vmatpush.bf16.msra.mxu0 %v767_v1  ;;  %v770_v15 = vld [vmem:[#allocation7 + $0x48] sm:$0xff]  ;;  %v769_v16 = vld [vmem:[#allocation7 + $0x40] sm:$0xff]  ;;  %v784_v17 = vld [vmem:[#allocation7 + $0xb8] sm:$0xff] }
  0x21   :  { %268 = vmatpush.bf16.msra.mxu1 %v775_v3  ;;  %360 = vmatpush.bf16.msra.mxu2 %v784_v17  ;;  %v783_v18 = vld [vmem:[#allocation7 + $0xb0] sm:$0xff]  ;;  %v782_v19 = vld [vmem:[#allocation7 + $0xa8] sm:$0xff]  ;;  %v119_v20 = vld [vmem:[#allocation9] sm:$0x1] }
  0x22   :  { %v781_v21 = vld [vmem:[#allocation7 + $0xa0] sm:$0xff]  ;;  %v120_v22 = vunpack.c.l.bf16 %v119_v20  ;;  %v99_v26 = vld [vmem:[#allocation3] sm:$0xff]   ;;  %v779_v37 = vld [vmem:[#allocation7 + $0x90] sm:$0xff] }
  0x23   :  { %v101_v28 = vunpack.c.l.bf16 %v99_v26  ;;  %v102_v30 = vunpack.c.h.bf16 %v99_v26  ;;  %v780_v36 = vld [vmem:[#allocation7 + $0x98] sm:$0xff]  ;;  %v778_v38 = vld [vmem:[#allocation7 + $0x88] sm:$0xff]  ;;  %v777_v39 = vld [vmem:[#allocation7 + $0x80] sm:$0xff]  ;;  %v379_v20 = vstv %s690_s16 }
  0x24   :  { %178 = vmatpush.bf16.msra.mxu0 %v766_v4  ;;  %v121_v24 = vperm.slane %v120_v22, 0  ;;  %v792_v40 = vld [vmem:[#allocation7 + $0xf8] sm:$0xff]  ;;  %v791_v41 = vld [vmem:[#allocation7 + $0xf0] sm:$0xff]  ;;  %v790_v42 = vld [vmem:[#allocation7 + $0xe8] sm:$0xff]  ;;  %v218_v45 = vperm.slane %v120_v22, 1 }
  0x25   :  { %269 = vmatpush.bf16.msra.mxu1 %v774_v5  ;;  %361 = vmatpush.bf16.msra.mxu2 %v783_v18  ;;  %v789_v43 = vld [vmem:[#allocation7 + $0xe0] sm:$0xff]  ;;  %v788_v54 = vld [vmem:[#allocation7 + $0xd8] sm:$0xff]  ;;  %v787_v55 = vld [vmem:[#allocation7 + $0xd0] sm:$0xff]  ;;  %v286_v18 = vstv %s657_s3 }
  0x26   :  { %451 = vmatpush.bf16.msra.mxu3 %v792_v40  ;;  %v786_v56 = vld [vmem:[#allocation7 + $0xc8] sm:$0xff]  ;;  %v785_v57 = vld [vmem:[#allocation7 + $0xc0] sm:$0xff] }
  0x27   :  { %v309_v58 = vld [vmem:[#allocation9] sm:$0x2] }
  0x28   :  { %179 = vmatpush.bf16.msra.mxu0 %v765_v6  ;;  %v310_v59 = vunpack.c.l.bf16 %v309_v58  ;;  %v801_v6 = vld [vmem:[#allocation11 + $0x38] sm:$0xff] }
  0x29   :  { %270 = vmatpush.bf16.msra.mxu1 %v773_v7  ;;  %362 = vmatpush.bf16.msra.mxu2 %v782_v19  ;;  %v800_v7 = vld [vmem:[#allocation11 + $0x30] sm:$0xff]  ;;  %v195_v19 = vstv %s194_s4 }
  0x2a   :  { %452 = vmatpush.bf16.msra.mxu3 %v791_v41  ;;  %v311_v61 = vperm.slane %v310_v59, 2 }
  0x2c   :  { %180 = vmatpush.bf16.msra.mxu0 %v764_v8  ;;  %v799_v8 = vld [vmem:[#allocation11 + $0x28] sm:$0xff] }
  0x2d   :  { %271 = vmatpush.bf16.msra.mxu1 %v772_v13  ;;  %363 = vmatpush.bf16.msra.mxu2 %v781_v21  ;;  %v794_v13 = vld [vmem:[#allocation11] sm:$0xff] }
  0x2e   :  { %453 = vmatpush.bf16.msra.mxu3 %v790_v42 }
  0x30   :  { %181 = vmatpush.bf16.msra.mxu0 %v763_v9  ;;  %v798_v9 = vld [vmem:[#allocation11 + $0x20] sm:$0xff] }
  0x31   :  { %272 = vmatpush.bf16.msra.mxu1 %v771_v14  ;;  %364 = vmatpush.bf16.msra.mxu2 %v780_v36  ;;  %v402_v14 = vperm.slane %v310_v59, 3 }
  0x32   :  { %454 = vmatpush.bf16.msra.mxu3 %v789_v43 }
  0x34   :  { %182 = vmatpush.bf16.msra.mxu0 %v762_v10  ;;  %v797_v10 = vld [vmem:[#allocation11 + $0x18] sm:$0xff] }
  0x35   :  { %273 = vmatpush.bf16.msra.mxu1 %v770_v15  ;;  %365 = vmatpush.bf16.msra.mxu2 %v779_v37 }
  0x36   :  { %455 = vmatpush.bf16.msra.mxu3 %v788_v54 }
  0x38   :  { %183 = vmatpush.bf16.msra.mxu0 %v761_v11  ;;  %v796_v11 = vld [vmem:[#allocation11 + $0x10] sm:$0xff] }
  0x39   :  { %274 = vmatpush.bf16.msra.mxu1 %v769_v16  ;;  %366 = vmatpush.bf16.msra.mxu2 %v778_v38 }
  0x3a   :  { %456 = vmatpush.bf16.msra.mxu3 %v787_v55 }
  0x3b   :  { %184 = vmatmul.bf16.vlgmr.msra.gmra.mxu0 %v760_v12  ;;  %v795_v12 = vld [vmem:[#allocation11 + $0x8] sm:$0xff] }
  0x3c   :  { %551 = vmatpush.bf16.msrb.mxu0 %v801_v6 }
  0x3d   :  { %367 = vmatpush.bf16.msra.mxu2 %v777_v39 }
  0x3e   :  { %457 = vmatpush.bf16.msra.mxu3 %v786_v56 }
  0x40   :  { %552 = vmatpush.bf16.msrb.mxu0 %v800_v7 }
  0x42   :  { %458 = vmatpush.bf16.msra.mxu3 %v785_v57 }
  0x44   :  { %553 = vmatpush.bf16.msrb.mxu0 %v799_v8 }
  0x48   :  { %554 = vmatpush.bf16.msrb.mxu0 %v798_v9 }
  0x4c   :  { %555 = vmatpush.bf16.msrb.mxu0 %v797_v10 }
  0x50   :  { %556 = vmatpush.bf16.msrb.mxu0 %v796_v11 }
  0x54   :  { %557 = vmatpush.bf16.msrb.mxu0 %v795_v12 }
  0x58   :  { %558 = vmatpush.bf16.msrb.mxu0 %v794_v13 }
  0xb8   :  { %v185_v23 = vpop.f32.mrf.mxu0 }
  0xb9   :  { %v186_v25 = vadd.f32 %v185_v23, %v121_v24 }
  0xbb   :  { %v190_v29 = vmax.f32 %v186_v25, 0.0 }
  0xbd   :  { %v1014_v33 = vadd.f32 %v190_v29, %v101_v28 }
  0xbf   :  { %v196_v26 = vmul.f32 %v195_v19, %v1014_v33 }
  0xc0   :  { %v187_v27 = vpop.f32.mrf.mxu0 }
  0xc1   :  { %v188_v31 = vadd.f32 %v187_v27, %v121_v24  ;;  %v470_v27 = vstv %s723_s17 }
  0xc3   :  { %v191_v32 = vmax.f32 %v188_v31, 0.0 }
  0xc5   :  { %v1016_v34 = vadd.f32 %v191_v32, %v102_v30 }
  0xc7   :  { %v200_v35 = vpack.c.bf16 %v1016_v34, %v1014_v33  ;;  %v197_v28 = vmul.f32 %v195_v19, %v1016_v34 }
  0xc9   :  { %275 = vmatmul.bf16.vlgmr.msra.gmra.mxu1 %v200_v35 }
 0x146   :  { %v276_v44 = vpop.f32.mrf.mxu1 }
 0x147   :  { %v277_v46 = vadd.f32 %v276_v44, %v218_v45 }
 0x149   :  { %v281_v48 = vmax.f32 %v277_v46, 0.0 }
 0x14b   :  { %v283_v51 = vadd.f32 %v281_v48, %v1014_v33 }
 0x14d   :  { %v287_v22 = vmul.f32 %v286_v18, %v283_v51 }
 0x14e   :  { %v278_v47 = vpop.f32.mrf.mxu1 }
 0x14f   :  { %v279_v49 = vadd.f32 %v278_v47, %v218_v45  ;;  %v289_v32 = vadd.f32 %v287_v22, %v196_v26 }
 0x151   :  { %v282_v50 = vmax.f32 %v279_v49, 0.0 }
 0x153   :  { %v284_v52 = vadd.f32 %v282_v50, %v1016_v34 }
 0x155   :  { %v291_v53 = vpack.c.bf16 %v284_v52, %v283_v51  ;;  %v288_v23 = vmul.f32 %v286_v18, %v284_v52 }
 0x157   :  { %368 = vmatmul.bf16.vlgmr.msra.gmra.mxu2 %v291_v53  ;;  %v290_v35 = vadd.f32 %v288_v23, %v197_v28 }
 0x1da   :  { %v369_v60 = vpop.f32.mrf.mxu2 }
 0x1db   :  { %v370_v62 = vadd.f32 %v369_v60, %v311_v61 }
 0x1dd   :  { %v374_v0 = vmax.f32 %v370_v62, 0.0 }
 0x1df   :  { %v376_v3 = vadd.f32 %v374_v0, %v283_v51 }
 0x1e1   :  { %v380_v29 = vmul.f32 %v379_v20, %v376_v3 }
 0x1e2   :  { %v371_v63 = vpop.f32.mrf.mxu2 }
 0x1e3   :  { %v372_v1 = vadd.f32 %v371_v63, %v311_v61  ;;  %v382_v38 = vadd.f32 %v380_v29, %v289_v32 }
 0x1e5   :  { %v375_v2 = vmax.f32 %v372_v1, 0.0 }
 0x1e7   :  { %v377_v4 = vadd.f32 %v375_v2, %v284_v52 }
 0x1e9   :  { %v384_v5 = vpack.c.bf16 %v377_v4, %v376_v3  ;;  %v381_v30 = vmul.f32 %v379_v20, %v377_v4 }
 0x1eb   :  { %459 = vmatmul.bf16.vlgmr.msra.gmra.mxu3 %v384_v5  ;;  %v383_v39 = vadd.f32 %v381_v30, %v290_v35 }
 0x26e   :  { %v460_v15 = vpop.f32.mrf.mxu3 }
 0x26f   :  { %v461_v16 = vadd.f32 %v460_v15, %v402_v14 }
 0x271   :  { %v465_v17 = vmax.f32 %v461_v16, 0.0 }
 0x273   :  { %v467_v24 = vadd.f32 %v465_v17, %v376_v3 }
 0x275   :  { %v471_v36 = vmul.f32 %v470_v27, %v467_v24 }
 0x276   :  { %v462_v21 = vpop.f32.mrf.mxu3 }
 0x277   :  { %v463_v25 = vadd.f32 %v462_v21, %v402_v14  ;;  %v473_v41 = vadd.f32 %v471_v36, %v382_v38 }
 0x279   :  { %v466_v31 = vmax.f32 %v463_v25, 0.0 }
 0x27b   :  { %v468_v37 = vadd.f32 %v466_v31, %v377_v4 }
 0x27d   :  { %v472_v40 = vmul.f32 %v470_v27, %v468_v37 }
 0x27f   :  { %v474_v42 = vadd.f32 %v472_v40, %v383_v39 }
 0x281   :  { %v805_v43 = vpack.c.bf16 %v474_v42, %v473_v41 }
 0x283   :  { %806 = vst [vmem:[#allocation2] sm:$0xff] %v805_v43  }
 0x28a   :  { %v793_v44 = vld [vmem:[#allocation2] sm:$0xff] }
 0x28b   :  { %559 = vmatmul.bf16.vlgmr.msrb.gmra.mxu0 %v793_v44 }
 0x308   :  { %v560_v33 = vpop.f32.mrf.mxu0 }
 0x309   :  { %565 = vst [vmem:[#allocation13] sm:$0xff] %v560_v33 }
 0x310   :  { %v562_v34 = vpop.f32.mrf.mxu0 }
 0x311   :  { %566 = vst [vmem:[#allocation13 + $0x8] sm:$0xff] %v562_v34 }
 0x312   :  { %579 = dma.vmem_to_hbm [thread:$0]  %s572_s19, 256, %s574_s22, [#allocation5], %s967_s23, %s967_s23, %s968_s24  }
 0x313   :  { %957 = dma.done.wait [#allocation5], 256  }
 0x314   :  { %958 = vsyncadd [#allocation5], 4294967040 }
 0x315   :  { %584 = vsyncpa [#allocation4], 1 }
 0x316   :  { %585 = vsyncpa [#allocation8], 1 }
 0x317   :  { %586 = vsyncpa [#allocation12], 1 }
 0x318   :  { %587 = vsyncpa [#allocation5], 1 }
 0x319   :  { %588 = vsyncpa [#allocation6], 1 }

</bundles_post_ra>
